<compile_context>
chip_gen: v7x
topology: tpu7x:2x2x1
jax: 0.10.0
libtpu: 0.0.40
codegen_flags: <defaults>
</compile_context>

<pallas_src>
import jax
import jax.numpy as jnp
import numpy as np
from jax.experimental import pallas as pl
from jax.experimental.pallas import tpu as pltpu

N_CLASSES = 2
FEATURES = 16      # must equal H*W (consequence of view/permute in torch forward)
NUM_KERNELS = 64
KSIZE = 3
BANDED_MAX_L = 16  # use the fused block-banded matmul when L = C <= this


def _lucid_banded_kernel(x_ref, wb_ref, cb_ref, lw_ref, lb_ref, out_ref):
    # x_ref:  (TB, L*16) f32    -- TB batches on sublanes, lanes = (position, feature)
    # wb_ref: (L*16, L*64) bf16 -- block-banded conv weights (off-band zeros = zero pad)
    # cb_ref: (1, 64) f32, lw_ref: (64, n_classes) f32, lb_ref: (1, n_classes) f32
    # out_ref: (TB, n_classes) f32
    x = x_ref[...].astype(jnp.bfloat16)            # VPU cast, hidden under input DMA
    L = x.shape[1] // FEATURES
    # One MXU matmul computes every conv position at once.
    acc = jnp.dot(x, wb_ref[...], preferred_element_type=jnp.float32)   # (TB, L*64)
    # AdaptiveMaxPool1d(1): running max over the L column groups of 64 lanes.
    pooled = acc[:, :NUM_KERNELS]
    for t in range(1, L):                          # static, small (L <= BANDED_MAX_L)
        pooled = jnp.maximum(pooled, acc[:, t * NUM_KERNELS:(t + 1) * NUM_KERNELS])
    # Bias is position-invariant and ReLU commutes with max -> apply once.
    pooled = jnp.maximum(pooled + cb_ref[...], 0.0)
    logits = jnp.dot(pooled, lw_ref[...],
                     preferred_element_type=jnp.float32) + lb_ref[...]
    out_ref[...] = logits.astype(out_ref.dtype)


def _lucid_loop_kernel(x_ref, w_ref, cb_ref, lw_ref, lb_ref, out_ref):
    # Fallback for larger L: per-position (TB, 48) @ (48, 64) matmuls.  No
    # in-VMEM zero-pad concat: edge positions use 32-lane windows against the
    # matching rows of the im2col weight.
    # TODO(synk): for very large C, switch to a fori_loop / L-grid-axis variant
    # to bound the unrolled code size.
    x = x_ref[...].astype(jnp.bfloat16)
    L = x.shape[1] // FEATURES
    w = w_ref[...]                                 # (48, 64) bf16, rows = (tap, feature)
    # t = 0: taps k=1,2 against positions 0,1 (tap k=0 hits the zero pad).
    pooled = jnp.dot(x[:, :2 * FEATURES], w[FEATURES:, :],
                     preferred_element_type=jnp.float32)
    for t in range(1, L - 1):                      # interior: full 48-lane windows
        win = x[:, (t - 1) * FEATURES:(t + 2) * FEATURES]
        pooled = jnp.maximum(
            pooled, jnp.dot(win, w, preferred_element_type=jnp.float32))
    # t = L-1: taps k=0,1 against positions L-2, L-1.
    pooled = jnp.maximum(
        pooled, jnp.dot(x[:, (L - 2) * FEATURES:], w[:2 * FEATURES, :],
                        preferred_element_type=jnp.float32))
    pooled = jnp.maximum(pooled + cb_ref[...], 0.0)
    logits = jnp.dot(pooled, lw_ref[...],
                     preferred_element_type=jnp.float32) + lb_ref[...]
    out_ref[...] = logits.astype(out_ref.dtype)


def _banded_conv_weight(conv_w, L):
    """conv_w: (64, 16, 3) -> block-banded (L*16, L*64) weight.

    Wb[s*16 + i, t*64 + o] = conv_w[o, i, s - t + 1] when |s - t| <= 1 else 0.
    The off-band zeros (and missing s = -1 / s = L rows) realize the Conv1d
    zero padding at t = 0 and t = L - 1.
    """
    O, F, K = conv_w.shape
    wk = jnp.transpose(conv_w, (2, 1, 0))          # (K, F, O) = (tap, in_feat, out_ch)
    wb = jnp.zeros((L * F, L * O), conv_w.dtype)
    for t in range(L):
        for k in range(K):
            s = t + k - 1
            if 0 <= s < L:
                wb = wb.at[s * F:(s + 1) * F, t * O:(t + 1) * O].set(wk[k])
    return wb


def _round_up(v, m):
    return (v + m - 1) // m * m


def _num_tensorcores():
    """Best-effort TensorCore count per chip (v7x = 2, earlier gens = 1)."""
    try:
        kind = jax.devices()[0].device_kind.lower()
        return 2 if "v7" in kind else 1
    except Exception:
        return 1


def _choose_batch_tile(B, lf_lanes, acc_lanes):
    """Batches (sublane rows) per grid step.

    Sized so the per-step working set (double-buffered f32 input block, bf16
    working copy, f32 conv accumulator, pooled/logits temporaries) is a few
    MiB: big enough to amortize the ~0.35 us per-grid-step overhead, small
    enough to stay well under the scoped VMEM limit on every generation.
    """
    per_row_bytes = (2 * 4 * lf_lanes         # double-buffered f32 input block
                     + 2 * lf_lanes           # in-kernel bf16 copy
                     + 4 * acc_lanes          # f32 conv accumulator
                     + 4 * 2 * NUM_KERNELS)   # pooled + misc temporaries
    budget = 12 << 20
    tb = max(8, (budget // per_row_bytes) // 8 * 8)
    cores = _num_tensorcores()
    if cores > 1 and B >= 2048:
        # Split the batch axis across TensorCores only when each core still
        # gets a large tile.
        tb = min(tb, _round_up(-(-B // cores), 8))
    tb = min(tb, _round_up(B, 8))
    return max(8, tb)


def lucid_forward(x, conv_w, conv_b, lin_w, lin_b):
    """x: (B, C, H, W) f32; conv_w: (64, 16, 3); conv_b: (64,);
    lin_w: (2, 64); lin_b: (2,).  Returns (B, 2) f32."""
    B, C, H, W = x.shape
    F = H * W
    assert F == FEATURES, "Lucid requires H*W == features (16)"
    L = C
    LF = L * F

    # Free metadata reshape of the contiguous NCHW input; stays f32 so the
    # kernel's input DMA is the only HBM pass over x.
    x2 = x.reshape(B, LF)

    cb = conv_b.reshape(1, NUM_KERNELS).astype(jnp.float32)
    lw = jnp.transpose(lin_w).astype(jnp.float32)          # (64, n_classes)
    lb = lin_b.reshape(1, N_CLASSES).astype(jnp.float32)

    if L <= BANDED_MAX_L:
        wc = _banded_conv_weight(conv_w, L).astype(jnp.bfloat16)   # (L*16, L*64)
        kernel = _lucid_banded_kernel
        acc_lanes = L * NUM_KERNELS
    else:
        # im2col taps: wc[k*16 + i, o] = conv_w[o, i, k]
        wc = jnp.transpose(conv_w, (2, 1, 0)).reshape(KSIZE * F, NUM_KERNELS)
        wc = wc.astype(jnp.bfloat16)
        kernel = _lucid_loop_kernel
        acc_lanes = 2 * NUM_KERNELS

    TB = _choose_batch_tile(B, LF, acc_lanes)
    grid = (pl.cdiv(B, TB),)   # ragged last block: out-of-range writes are masked

    flops = 2 * B * L * (KSIZE * F) * NUM_KERNELS + 2 * B * NUM_KERNELS * N_CLASSES
    bytes_accessed = (x2.size * 4 + wc.size * 2 +
                      (cb.size + lw.size + lb.size) * 4 + B * N_CLASSES * 4)

    out = pl.pallas_call(
        kernel,
        out_shape=jax.ShapeDtypeStruct((B, N_CLASSES), jnp.float32),
        grid=grid,
        in_specs=[
            pl.BlockSpec((TB, LF), lambda i: (i, 0)),
            pl.BlockSpec(wc.shape, lambda i: (0, 0)),
            pl.BlockSpec((1, NUM_KERNELS), lambda i: (0, 0)),
            pl.BlockSpec((NUM_KERNELS, N_CLASSES), lambda i: (0, 0)),
            pl.BlockSpec((1, N_CLASSES), lambda i: (0, 0)),
        ],
        out_specs=pl.BlockSpec((TB, N_CLASSES), lambda i: (i, 0)),
        compiler_params=pltpu.CompilerParams(
            dimension_semantics=("parallel",),
            vmem_limit_bytes=32 << 20),
        cost_estimate=pl.CostEstimate(
            flops=flops, transcendentals=0, bytes_accessed=bytes_accessed),
    )(x2, wc, cb, lw, lb)
    return out


def _reference(x, conv_w, conv_b, lin_w, lin_b):
    """Pure-JAX f32 reference mirroring the torch forward."""
    B, C, H, W = x.shape
    xi = x.reshape(B, C, H * W).transpose(0, 2, 1)       # (B, 16, C)
    y = jax.lax.conv_general_dilated(
        xi, conv_w, window_strides=(1,), padding="SAME",
        dimension_numbers=("NCH", "OIH", "NCH"))
    y = y + conv_b[None, :, None]
    y = jnp.maximum(y, 0.0)
    p = jnp.max(y, axis=-1)                              # (B, 64)
    return p @ lin_w.T + lin_b


if __name__ == "__main__":
    key = jax.random.PRNGKey(0)
    k1, k2, k3, k4, k5 = jax.random.split(key, 5)

    # Small shapes consistent with the module: H*W must be 16.
    B, C, H, W = 2, 4, 4, 4
    x = jax.random.normal(k1, (B, C, H, W), jnp.float32)

    conv_w = jax.random.normal(k2, (NUM_KERNELS, FEATURES, KSIZE), jnp.float32) * 0.1
    conv_b = jax.random.normal(k3, (NUM_KERNELS,), jnp.float32) * 0.1
    lin_w = jax.random.normal(k4, (N_CLASSES, NUM_KERNELS), jnp.float32) * 0.1
    lin_b = jax.random.normal(k5, (N_CLASSES,), jnp.float32) * 0.1

    out = jax.block_until_ready(lucid_forward(x, conv_w, conv_b, lin_w, lin_b))

    ref = _reference(x, conv_w, conv_b, lin_w, lin_b)
    assert out.shape == (B, N_CLASSES)
    # bf16 MXU operands -> loosened tolerance vs the f32 reference.
    np.testing.assert_allclose(np.asarray(out), np.asarray(ref), rtol=2e-2, atol=2e-2)
    print("KERNEL_OK")
</pallas_src>

<mosaic_0001>
module attributes {stable_mosaic.version = 11 : i64} {
  func.func @_lucid_banded_kernel(%arg0: i32, %arg1: memref<8x64xf32, #tpu.memory_space<vmem>>, %arg2: memref<64x256xbf16, #tpu.memory_space<vmem>>, %arg3: memref<1x64xf32, #tpu.memory_space<vmem>>, %arg4: memref<64x2xf32, #tpu.memory_space<vmem>>, %arg5: memref<1x2xf32, #tpu.memory_space<vmem>>, %arg6: memref<8x2xf32, #tpu.memory_space<vmem>>) attributes {dimension_semantics = [#tpu.dimension_semantics<parallel>], iteration_bounds = array<i64: 1>, scalar_prefetch = 0 : i64, scratch_operands = 0 : i64, tpu.core_type = #tpu.core_type<tc>, window_params = [{transform_indices = @transform_0, window_bounds = array<i64: 8, 64>}, {pipeline_mode = #tpu.pipeline_mode<synchronous>, transform_indices = @transform_1, window_bounds = array<i64: 64, 256>}, {pipeline_mode = #tpu.pipeline_mode<synchronous>, transform_indices = @transform_2, window_bounds = array<i64: 1, 64>}, {pipeline_mode = #tpu.pipeline_mode<synchronous>, transform_indices = @transform_3, window_bounds = array<i64: 64, 2>}, {pipeline_mode = #tpu.pipeline_mode<synchronous>, transform_indices = @transform_4, window_bounds = array<i64: 1, 2>}, {transform_indices = @transform_5, window_bounds = array<i64: 8, 2>}]} {
    %c0 = arith.constant 0 : index
    %c0_0 = arith.constant 0 : index
    %0 = vector.load %arg1[%c0, %c0_0] : memref<8x64xf32, #tpu.memory_space<vmem>>, vector<8x64xf32>
    %1 = arith.truncf %0 : vector<8x64xf32> to vector<8x64xbf16>
    %c0_1 = arith.constant 0 : index
    %c0_2 = arith.constant 0 : index
    %2 = vector.load %arg2[%c0_1, %c0_2] : memref<64x256xbf16, #tpu.memory_space<vmem>>, vector<64x256xbf16>
    %cst = arith.constant dense<0.000000e+00> : vector<8x256xf32>
    %3 = tpu.matmul %1, %2, %cst {dimension_numbers = #tpu.dot_dimension_numbers<[1], [0], [0], [1], [0, 0, 1, 1], [], []>} : vector<8x64xbf16>, vector<64x256xbf16>, vector<8x256xf32> -> vector<8x256xf32>
    %4 = vector.extract_strided_slice %3 {offsets = [0, 0], sizes = [8, 64], strides = [1, 1]} : vector<8x256xf32> to vector<8x64xf32>
    %5 = vector.extract_strided_slice %3 {offsets = [0, 64], sizes = [8, 64], strides = [1, 1]} : vector<8x256xf32> to vector<8x64xf32>
    %6 = arith.maximumf %4, %5 : vector<8x64xf32>
    %7 = vector.extract_strided_slice %3 {offsets = [0, 128], sizes = [8, 64], strides = [1, 1]} : vector<8x256xf32> to vector<8x64xf32>
    %8 = arith.maximumf %6, %7 : vector<8x64xf32>
    %9 = vector.extract_strided_slice %3 {offsets = [0, 192], sizes = [8, 64], strides = [1, 1]} : vector<8x256xf32> to vector<8x64xf32>
    %10 = arith.maximumf %8, %9 : vector<8x64xf32>
    %c0_3 = arith.constant 0 : index
    %c0_4 = arith.constant 0 : index
    %11 = vector.load %arg3[%c0_3, %c0_4] : memref<1x64xf32, #tpu.memory_space<vmem>>, vector<1x64xf32>
    %12 = vector.broadcast %11 : vector<1x64xf32> to vector<8x64xf32>
    %13 = arith.addf %10, %12 : vector<8x64xf32>
    %cst_5 = arith.constant 0.000000e+00 : f32
    %14 = vector.broadcast %cst_5 : f32 to vector<8x64xf32>
    %15 = arith.maximumf %13, %14 : vector<8x64xf32>
    %c0_6 = arith.constant 0 : index
    %c0_7 = arith.constant 0 : index
    %16 = vector.load %arg4[%c0_6, %c0_7] : memref<64x2xf32, #tpu.memory_space<vmem>>, vector<64x2xf32>
    %cst_8 = arith.constant dense<0.000000e+00> : vector<8x2xf32>
    %17 = tpu.matmul %15, %16, %cst_8 {dimension_numbers = #tpu.dot_dimension_numbers<[1], [0], [0], [1], [0, 0, 1, 1], [], []>} : vector<8x64xf32>, vector<64x2xf32>, vector<8x2xf32> -> vector<8x2xf32>
    %c0_9 = arith.constant 0 : index
    %c0_10 = arith.constant 0 : index
    %18 = vector.load %arg5[%c0_9, %c0_10] : memref<1x2xf32, #tpu.memory_space<vmem>>, vector<1x2xf32>
    %19 = vector.broadcast %18 : vector<1x2xf32> to vector<8x2xf32>
    %20 = arith.addf %17, %19 : vector<8x2xf32>
    %c0_11 = arith.constant 0 : index
    %c0_12 = arith.constant 0 : index
    %21 = vector.load %arg6[%c0_11, %c0_12] : memref<8x2xf32, #tpu.memory_space<vmem>>, vector<8x2xf32>
    tpu.vector_store %arg6[%c0_11, %c0_12], %20 {strides = array<i32>} : memref<8x2xf32, #tpu.memory_space<vmem>>, vector<8x2xf32>,
    return
  }
  func.func @transform_0(%arg0: i32) -> (i32, i32) {
    %c0_i32 = arith.constant 0 : i32
    %c0_i32_0 = arith.constant 0 : i32
    return %arg0, %c0_i32 : i32, i32
  }
  func.func @transform_1(%arg0: i32) -> (i32, i32) {
    %c0_i32 = arith.constant 0 : i32
    %c0_i32_0 = arith.constant 0 : i32
    %c0_i32_1 = arith.constant 0 : i32
    return %c0_i32, %c0_i32_0 : i32, i32
  }
  func.func @transform_2(%arg0: i32) -> (i32, i32) {
    %c0_i32 = arith.constant 0 : i32
    %c0_i32_0 = arith.constant 0 : i32
    %c0_i32_1 = arith.constant 0 : i32
    return %c0_i32, %c0_i32_0 : i32, i32
  }
  func.func @transform_3(%arg0: i32) -> (i32, i32) {
    %c0_i32 = arith.constant 0 : i32
    %c0_i32_0 = arith.constant 0 : i32
    %c0_i32_1 = arith.constant 0 : i32
    return %c0_i32, %c0_i32_0 : i32, i32
  }
  func.func @transform_4(%arg0: i32) -> (i32, i32) {
    %c0_i32 = arith.constant 0 : i32
    %c0_i32_0 = arith.constant 0 : i32
    %c0_i32_1 = arith.constant 0 : i32
    return %c0_i32, %c0_i32_0 : i32, i32
  }
  func.func @transform_5(%arg0: i32) -> (i32, i32) {
    %c0_i32 = arith.constant 0 : i32
    %c0_i32_0 = arith.constant 0 : i32
    return %arg0, %c0_i32 : i32, i32
  }
}

</mosaic_0001>

<bundles_post_ra>
// kernel: tpu_custom_call.1
= control target key start
LH: loop header
LB: loop body
LE: loop exit
PB: predicated region body
PF: predicated region fallthrough
CT: control target
= control target key end

     0   :  { %10 = vsyncpa [#allocation3], 0  ;;  %v339_v2 = vmov 0   ;;  %vm72_vm0 = vcmask 523264   ;;  %v340_v14 = vmov 0.0|0.0   ;;  %vm341_vm1 = vmmov 0   ;;  %s448_s0 = inlined_call_operand.vmem [shape: f32[2,64], index: 0, kind: input, shape index: {}]   ;;  %s449_s1 = inlined_call_operand.vmem [shape: bf16[64,256], index: 1, kind: input, shape index: {}]   ;;  %s450_s2 = inlined_call_operand.vmem [shape: f32[1,64], index: 2, kind: input, shape index: {}]   ;;  %s451_s3 = inlined_call_operand.vmem [shape: f32[64,2], index: 3, kind: input, shape index: {}]   ;;  %s452_s4 = inlined_call_operand.vmem [shape: f32[1,2], index: 4, kind: input, shape index: {}]   ;;  %s453_s5 = inlined_call_operand.hbm [shape: f32[2,2], index: 5, kind: output, shape index: {}]  }
   0x1   :  { %v303_v0 = vld [vmem:[%s449_s1 + $0x4] ss:$8 sps:$4 sm:$0xff]   ;;  %v305_v1 = vld [vmem:[%s449_s1] ss:$8 sps:$4 sm:$0xff]   ;;  %108 = vmatprep.mubr.bf16.mxu0 %v339_v2  ;;  %v306_v3 = vld [vmem:[%s449_s1 + $0x14] ss:$8 sps:$4 sm:$0xff]   ;;  %283 = vmatprep.subr.bf16.mxu1 %v340_v14 }
   0x2   :  { %76 = vmatprep.subr.bf16.mxu0 %v303_v0  ;;  %v308_v4 = vld [vmem:[%s449_s1 + $0x10] ss:$8 sps:$4 sm:$0xff]   ;;  %v309_v5 = vld [vmem:[%s449_s1 + $0x24] ss:$8 sps:$4 sm:$0xff]   ;;  %v311_v6 = vld [vmem:[%s449_s1 + $0x20] ss:$8 sps:$4 sm:$0xff]  }
   0x3   :  { %77 = vmatpush1.bf16.msra.mxu0 %v305_v1  ;;  %v312_v7 = vld [vmem:[%s449_s1 + $0x34] ss:$8 sps:$4 sm:$0xff]   ;;  %v314_v8 = vld [vmem:[%s449_s1 + $0x30] ss:$8 sps:$4 sm:$0xff]   ;;  %v22_v9 = vld [vmem:[%s448_s0] sm:$0xff]  ;;  %v342_v24 = vmov 0.0  }
   0x4   :  { %78 = vmatprep.subr.bf16.mxu0 %v306_v3  ;;  %v23_v10 = vpack.c.bf16 %v22_v9, %v22_v9  ;;  %v137_v11 = vld [vmem:[%s451_s3] sm:$0xff]  ;;  %v138_v12 = vld [vmem:[%s451_s3 + $0x8] sm:$0xff]  ;;  %v139_v13 = vld [vmem:[%s451_s3 + $0x10] sm:$0xff]  ;;  %280 = vmatprep.mubr.msk.f32.mxu1 %vm341_vm1, %v342_v24  ;;  %s343_s25 = smov 64   ;;  %vm225_vm2 = vcmask 15360  }
   0x5   :  { %v284_v15 = vpack.c.bf16 %v138_v12, %v137_v11  ;;  %v140_v16 = vld [vmem:[%s451_s3 + $0x18] sm:$0xff]  ;;  %v141_v18 = vld [vmem:[%s451_s3 + $0x20] sm:$0xff]  ;;  %v142_v19 = vld [vmem:[%s451_s3 + $0x28] sm:$0xff] }
   0x6   :  { %v287_v17 = vpack.c.bf16 %v140_v16, %v139_v13  ;;  %v290_v20 = vpack.c.bf16 %v142_v19, %v141_v18  ;;  %v143_v21 = vld [vmem:[%s451_s3 + $0x30] sm:$0xff]  ;;  %v144_v22 = vld [vmem:[%s451_s3 + $0x38] sm:$0xff]  ;;  %v252_v32 = vld [vmem:[%s450_s2] ss:$0 sm:$0xff] }
   0x7   :  { %79 = vmatpush1.bf16.msra.mxu0 %v308_v4  ;;  %285 = vmatpush3.bf16.msra.mxu1 %v284_v15  ;;  %v293_v23 = vpack.c.bf16 %v144_v22, %v143_v21  ;;  %v253_v37 = vld [vmem:[%s452_s4] ss:$0 sm:$0xff] }
   0x8   :  { %80 = vmatprep.subr.bf16.mxu0 %v309_v5  ;;  %286 = vmatprep.subr.bf16.mxu1 %v340_v14 }
   0xb   :  { %81 = vmatpush1.bf16.msra.mxu0 %v311_v6  ;;  %288 = vmatpush3.bf16.msra.mxu1 %v287_v17 }
   0xc   :  { %82 = vmatprep.subr.bf16.mxu0 %v312_v7  ;;  %289 = vmatprep.subr.bf16.mxu1 %v340_v14 }
   0xf   :  { %83 = vmatpush1.bf16.msra.mxu0 %v314_v8  ;;  %291 = vmatpush3.bf16.msra.mxu1 %v290_v20 }
  0x10   :  { %292 = vmatprep.subr.bf16.mxu1 %v340_v14 }
  0x12   :  { %251 = vmatmul.mubr.msk.bf16.vlgmr.msra.gmra.mrb[0].mxu0 %vm72_vm0, %v23_v10 }
  0x13   :  { %294 = vmatpush3.bf16.msra.mxu1 %v293_v23 }
  0xe5   :  { %v110_v25 = vpop.f32.mrb[0].mxu0 }
  0xe6   :  { %118 = vrot.lane.b32.xlu0 %v110_v25, %s343_s25  ;;  %v112_v26 = vpop.f32.mrb[1].mxu0 }
  0xe7   :  { %v114_v27 = vpop.f32.mrb[2].mxu0 }
  0xe8   :  { %v115_v28 = vpop.f32.mrb[3].mxu0 }
  0xea   :  { %124 = vrot.lane.b32.xlu0 %v112_v26, %s343_s25 }
 0x158   :  { %v119_v29 = vpop.permute.xlu0 %118 }
 0x159   :  { %v121_v30 = vmax.f32 %v110_v25, %v119_v29 }
 0x15b   :  { %v122_v31 = vmax.f32 %v121_v30, %v112_v26 }
 0x15c   :  { %v125_v33 = vpop.permute.xlu0 %124 }
 0x15d   :  { %v127_v34 = vmax.f32 %v122_v31, %v125_v33 }
 0x15f   :  { %v135_v35 = vadd.f32 %v252_v32, %v127_v34 }
 0x161   :  { %v136_v36 = vmax.f32 %v135_v35, 0.0 }
 0x163   :  { %281 = vmatmul.mubr.msk.f32.vlgmr.msra.gmra.mrb[0].mxu1 %vm72_vm0, %v136_v36 }
 0x236   :  { %v221_v38 = vpop.f32.mrb[0].mxu1 }
 0x237   :  { %v222_v39 = vadd.f32 %v253_v37, %v221_v38  ;;  %v282_v40 = vpop.f32.mrb[1].mxu1 }
 0x239   :  { %226 = vst.msk [vmem:[#allocation2] sm:$0xff] %vm225_vm2, %v222_v39 }
 0x23a   :  { %231 = vsyncadd [#allocation3], 96  ;;  %s344_s29 = smov [#allocation2]  }
 0x23b   :  { %s232_s30 = sshll.u32 %s344_s29, 4  ;;  %s233_s30 = int_to_ptr.vmem [resolvable:$true] %s232_s30 }
 0x23c   :  { %s315_s2 = scalar_lea.vmem %s233_s30, 32  ;;  %s319_s6 = scalar_lea.vmem %s233_s30, 128 }
 0x23d   :  { %p316_p0 = scmp.ne.s32.totalorder %s233_s30, %s315_s2  ;;  %p320_p1 = scmp.lt.s32.totalorder %s233_s30, %s233_s30 }
 0x23e   :  { %p321_p2 = scmp.lt.s32.totalorder %s319_s6, %s315_s2 }
 0x240   :  { %p322_p3 = por %p321_p2, %p320_p1 }
 0x242   :  { %p323_p4 = pnand %p322_p3, %p316_p0 }
 0x244   :  { %326 = shalt.err (!%p323_p4)
}
 0x245   :  { %s327_s4 = scalar_lea.hbm %s453_s5, 32 }
 0x246   :  { %p328_p5 = scmp.ne.s32.totalorder %s453_s5, %s327_s4  ;;  %p331_p6 = scmp.lt.u32.totalorder %s327_s4, %s453_s5 }
 0x248   :  { %p333_p7 = pnand %p331_p6, %p328_p5 }
 0x24a   :  { %336 = shalt.err (!%p333_p7)
}
 0x24b   :  { %s345_s13 = smov 32   ;;  %s346_s14 = smov 2  }
 0x24c   :  { %238 = dma.vmem_to_hbm [thread:$0]  %s233_s30, 32, %s453_s5, [#allocation3], %s345_s13, %s345_s13, %s346_s14  }
 0x24d   :  { %337 = dma.done.wait [#allocation3], 128  }
 0x24e   :  { %338 = vsyncadd [#allocation3], 4294967168 }
 0x24f   :  { %242 = vsyncpa [#allocation3], 1 }

</bundles_post_ra>
